<compile_context>
chip_gen: v5e
topology: v5e:2x2
jax: 0.10.0
libtpu: 0.0.40
codegen_flags: <defaults>
</compile_context>

<pallas_src>
import math
import jax
import jax.numpy as jnp
from jax.experimental import pallas as pl
from jax.experimental.pallas import tpu as pltpu

# ---- model hyper-parameters (small, consistent with the module) ----
N_KERNELS = 4
KERNEL_SIZE = 4
STRIDE_SIZE = 4
IN_CH = 2
IMG = 16
ACT_SIZE = (IMG - KERNEL_SIZE) // STRIDE_SIZE + 1          # 4
RNN_UNITS = 32
FLAT_SIZE = ACT_SIZE * ACT_SIZE * N_KERNELS                # 64
PATCH_DIM = ACT_SIZE * ACT_SIZE * IN_CH * KERNEL_SIZE * KERNEL_SIZE  # 512
BATCH = 2
FRAMES = 8
FC_OUT = 2


# ---------------------------------------------------------------------------
# Fused kernel: conv(+bias) -> ReLU -> RNN(relu, unrolled) -> FC.
# Rows are time-major: row index = t * BATCH + b.
# ---------------------------------------------------------------------------
def fused_forward_kernel(patches_ref, wconv_ref, bconv_ref,
                         wih_ref, whh_ref, brnn_ref,
                         wfc_ref, bfc_ref,
                         conv_ref, flat_ref, rnn_ref, fc_ref,
                         xp_ref):
    # Conv as one lane-dense matmul: (F*B, 512) @ (512, 64) -> (F*B, 64).
    # Column order of wconv already encodes torch's NCHW channel-major flatten.
    conv = jnp.dot(patches_ref[...], wconv_ref[...],
                   preferred_element_type=jnp.float32) + bconv_ref[...]
    conv_ref[...] = conv

    flat = jnp.maximum(conv, 0.0)                 # Flatten + ReLU
    flat_ref[...] = flat

    # Hoisted RNN input projection for all timesteps + combined bias (b_ih + b_hh):
    # (F*B, 64) @ (64, 32) -> (F*B, 32)
    xp_ref[...] = jnp.dot(flat, wih_ref[...],
                          preferred_element_type=jnp.float32) + brnn_ref[...]

    whh = whh_ref[...]                            # (H, H), loaded once
    h = jnp.zeros((BATCH, RNN_UNITS), jnp.float32)
    for t in range(FRAMES):                       # static unroll, T = 8
        x_t = xp_ref[pl.ds(t * BATCH, BATCH), :]  # (B, H) precomputed projection
        pre = x_t + jnp.dot(h, whh, preferred_element_type=jnp.float32)
        h = jnp.maximum(pre, 0.0)
        rnn_ref[pl.ds(t * BATCH, BATCH), :] = h

    # FC head on all hidden states at once: (F*B, 32) @ (32, 2) + b
    hs = rnn_ref[...]
    fc_ref[...] = jnp.dot(hs, wfc_ref[...],
                          preferred_element_type=jnp.float32) + bfc_ref[...]


def fused_forward(patches, w_conv_big, b_conv_big, wih_t, whh_t, b_rnn,
                  wfc_t, b_fc):
    M = patches.shape[0]                          # F * B = 16
    return pl.pallas_call(
        fused_forward_kernel,
        out_shape=(
            jax.ShapeDtypeStruct((M, FLAT_SIZE), jnp.float32),   # conv (pre-relu)
            jax.ShapeDtypeStruct((M, FLAT_SIZE), jnp.float32),   # flatten+relu
            jax.ShapeDtypeStruct((M, RNN_UNITS), jnp.float32),   # rnn hidden states
            jax.ShapeDtypeStruct((M, FC_OUT), jnp.float32),      # fc output
        ),
        in_specs=[
            pl.BlockSpec(patches.shape, lambda: (0, 0)),
            pl.BlockSpec(w_conv_big.shape, lambda: (0, 0)),
            pl.BlockSpec(b_conv_big.shape, lambda: (0, 0)),
            pl.BlockSpec(wih_t.shape, lambda: (0, 0)),
            pl.BlockSpec(whh_t.shape, lambda: (0, 0)),
            pl.BlockSpec(b_rnn.shape, lambda: (0, 0)),
            pl.BlockSpec(wfc_t.shape, lambda: (0, 0)),
            pl.BlockSpec(b_fc.shape, lambda: (0, 0)),
        ],
        out_specs=(
            pl.BlockSpec((M, FLAT_SIZE), lambda: (0, 0)),
            pl.BlockSpec((M, FLAT_SIZE), lambda: (0, 0)),
            pl.BlockSpec((M, RNN_UNITS), lambda: (0, 0)),
            pl.BlockSpec((M, FC_OUT), lambda: (0, 0)),
        ),
        scratch_shapes=[pltpu.VMEM((M, RNN_UNITS), jnp.float32)],  # xp buffer
    )(patches, w_conv_big, b_conv_big, wih_t, whh_t, b_rnn, wfc_t, b_fc)


# ---------------------------------------------------------------------------
# Parameter init (deterministic, mirroring the PyTorch __init__):
#   conv / fc weights ~ N(0, 0.01), biases = 0.01
#   rnn weights/biases ~ U(-1/sqrt(H), 1/sqrt(H))
# ---------------------------------------------------------------------------
def init_params(key):
    k = jax.random.split(key, 6)
    stdv = 1.0 / math.sqrt(RNN_UNITS)
    return {
        "conv_w": 0.01 * jax.random.normal(
            k[0], (N_KERNELS, IN_CH, KERNEL_SIZE, KERNEL_SIZE), jnp.float32),
        "conv_b": jnp.full((N_KERNELS,), 0.01, jnp.float32),
        "rnn_wih": jax.random.uniform(
            k[1], (RNN_UNITS, FLAT_SIZE), jnp.float32, -stdv, stdv),
        "rnn_whh": jax.random.uniform(
            k[2], (RNN_UNITS, RNN_UNITS), jnp.float32, -stdv, stdv),
        "rnn_bih": jax.random.uniform(
            k[3], (RNN_UNITS,), jnp.float32, -stdv, stdv),
        "rnn_bhh": jax.random.uniform(
            k[4], (RNN_UNITS,), jnp.float32, -stdv, stdv),
        "fc_w": 0.01 * jax.random.normal(k[5], (FC_OUT, RNN_UNITS), jnp.float32),
        "fc_b": jnp.full((FC_OUT,), 0.01, jnp.float32),
    }


# ---------------------------------------------------------------------------
# Full Model_n forward: cheap param/packing prep in JAX, all compute in one
# fused Pallas kernel.
# ---------------------------------------------------------------------------
def model_n_forward(params, x):
    B, F, C, H, W = x.shape
    K, A = KERNEL_SIZE, ACT_SIZE

    # Time-major frames (row = t*B + b); patch feature order = (ah, aw, c, kh, kw).
    xf = jnp.transpose(x, (1, 0, 2, 3, 4)).reshape(F * B, C, A, K, A, K)
    xf = jnp.transpose(xf, (0, 2, 4, 1, 3, 5))            # (FB, Ah, Aw, C, Kh, Kw)
    patches = xf.reshape(F * B, PATCH_DIM)                # (16, 512)

    # Block-diagonal conv weight: output column order = nk*A*A + ah*A + aw,
    # i.e. exactly torch's NCHW channel-major flatten.
    w_mat = params["conv_w"].reshape(N_KERNELS, C * K * K).T          # (CKK, NK)
    eye = jnp.eye(A * A, dtype=jnp.float32)
    w_conv_big = jnp.einsum("cn,ab->acnb", w_mat, eye).reshape(
        PATCH_DIM, FLAT_SIZE)                                          # (512, 64)
    b_conv_big = jnp.repeat(params["conv_b"], A * A).reshape(1, FLAT_SIZE)

    wih_t = params["rnn_wih"].T                                        # (64, 32)
    whh_t = params["rnn_whh"].T                                        # (32, 32)
    b_rnn = (params["rnn_bih"] + params["rnn_bhh"]).reshape(1, RNN_UNITS)
    wfc_t = params["fc_w"].T                                           # (32, 2)
    b_fc = params["fc_b"].reshape(1, FC_OUT)

    conv_flat, flat_relu, rnn_flat, fc_flat = fused_forward(
        patches, w_conv_big, b_conv_big, wih_t, whh_t, b_rnn, wfc_t, b_fc)

    out_conv = conv_flat.reshape(F, B, N_KERNELS, A, A).transpose(1, 0, 2, 3, 4)
    out_flat = flat_relu.reshape(F, B, FLAT_SIZE).transpose(1, 0, 2)
    out_rnn = rnn_flat.reshape(F, B, RNN_UNITS).transpose(1, 0, 2)
    out_fc = fc_flat.reshape(F, B, FC_OUT).transpose(1, 0, 2)
    return out_fc, out_conv, out_flat, out_rnn


# ---------------------------------------------------------------------------
# Pure-JAX reference (correctness sanity check).
# ---------------------------------------------------------------------------
def model_n_reference(params, x):
    B, F, C, H, W = x.shape
    A = ACT_SIZE
    xf = x.reshape(B * F, C, H, W)
    conv = jax.lax.conv_general_dilated(
        xf, params["conv_w"], window_strides=(STRIDE_SIZE, STRIDE_SIZE),
        padding="VALID", dimension_numbers=("NCHW", "OIHW", "NCHW"))
    conv = conv + params["conv_b"].reshape(1, N_KERNELS, 1, 1)
    out_conv = conv.reshape(B, F, N_KERNELS, A, A)
    out_flat = jnp.maximum(out_conv, 0.0).reshape(B, F, FLAT_SIZE)

    def step(h, x_t):
        h = jnp.maximum(x_t @ params["rnn_wih"].T + params["rnn_bih"]
                        + h @ params["rnn_whh"].T + params["rnn_bhh"], 0.0)
        return h, h

    h0 = jnp.zeros((B, RNN_UNITS), jnp.float32)
    _, hs = jax.lax.scan(step, h0, out_flat.transpose(1, 0, 2))
    out_rnn = hs.transpose(1, 0, 2)
    out_fc = out_rnn @ params["fc_w"].T + params["fc_b"]
    return out_fc, out_conv, out_flat, out_rnn


if __name__ == "__main__":
    key = jax.random.PRNGKey(0)
    pkey, xkey = jax.random.split(key)
    params = init_params(pkey)
    x = jax.random.normal(xkey, (BATCH, FRAMES, IN_CH, IMG, IMG), jnp.float32)

    outs = jax.jit(model_n_forward)(params, x)
    outs = jax.block_until_ready(outs)

    refs = model_n_reference(params, x)
    for o, r in zip(outs, refs):
        assert o.shape == r.shape, (o.shape, r.shape)
        assert jnp.allclose(o, r, atol=1e-4, rtol=1e-4)

    print("KERNEL_OK")
</pallas_src>

<mosaic_0001>
module attributes {stable_mosaic.version = 11 : i64} {
  func.func @fused_forward_kernel(%arg0: memref<16x512xf32, #tpu.memory_space<vmem>>, %arg1: memref<512x64xf32, #tpu.memory_space<vmem>>, %arg2: memref<1x64xf32, #tpu.memory_space<vmem>>, %arg3: memref<64x32xf32, #tpu.memory_space<vmem>>, %arg4: memref<32x32xf32, #tpu.memory_space<vmem>>, %arg5: memref<1x32xf32, #tpu.memory_space<vmem>>, %arg6: memref<32x2xf32, #tpu.memory_space<vmem>>, %arg7: memref<1x2xf32, #tpu.memory_space<vmem>>, %arg8: memref<16x64xf32, #tpu.memory_space<vmem>>, %arg9: memref<16x64xf32, #tpu.memory_space<vmem>>, %arg10: memref<16x32xf32, #tpu.memory_space<vmem>>, %arg11: memref<16x2xf32, #tpu.memory_space<vmem>>, %arg12: memref<16x32xf32, #tpu.memory_space<vmem>>) attributes {dimension_semantics = [], scalar_prefetch = 0 : i64, scratch_operands = 1 : i64, tpu.core_type = #tpu.core_type<tc>} {
    %c0 = arith.constant 0 : index
    %c0_0 = arith.constant 0 : index
    %0 = vector.load %arg0[%c0, %c0_0] : memref<16x512xf32, #tpu.memory_space<vmem>>, vector<16x512xf32>
    %c0_1 = arith.constant 0 : index
    %c0_2 = arith.constant 0 : index
    %1 = vector.load %arg1[%c0_1, %c0_2] : memref<512x64xf32, #tpu.memory_space<vmem>>, vector<512x64xf32>
    %cst = arith.constant dense<0.000000e+00> : vector<16x64xf32>
    %2 = tpu.matmul %0, %1, %cst {dimension_numbers = #tpu.dot_dimension_numbers<[1], [0], [0], [1], [0, 0, 1, 1], [], []>} : vector<16x512xf32>, vector<512x64xf32>, vector<16x64xf32> -> vector<16x64xf32>
    %c0_3 = arith.constant 0 : index
    %c0_4 = arith.constant 0 : index
    %3 = vector.load %arg2[%c0_3, %c0_4] : memref<1x64xf32, #tpu.memory_space<vmem>>, vector<1x64xf32>
    %4 = vector.broadcast %3 : vector<1x64xf32> to vector<16x64xf32>
    %5 = arith.addf %2, %4 : vector<16x64xf32>
    %c0_5 = arith.constant 0 : index
    %c0_6 = arith.constant 0 : index
    %6 = vector.load %arg8[%c0_5, %c0_6] : memref<16x64xf32, #tpu.memory_space<vmem>>, vector<16x64xf32>
    tpu.vector_store %arg8[%c0_5, %c0_6], %5 {strides = array<i32>} : memref<16x64xf32, #tpu.memory_space<vmem>>, vector<16x64xf32>,
    %cst_7 = arith.constant 0.000000e+00 : f32
    %7 = vector.broadcast %cst_7 : f32 to vector<16x64xf32>
    %8 = arith.maximumf %5, %7 : vector<16x64xf32>
    %c0_8 = arith.constant 0 : index
    %c0_9 = arith.constant 0 : index
    %9 = vector.load %arg9[%c0_8, %c0_9] : memref<16x64xf32, #tpu.memory_space<vmem>>, vector<16x64xf32>
    tpu.vector_store %arg9[%c0_8, %c0_9], %8 {strides = array<i32>} : memref<16x64xf32, #tpu.memory_space<vmem>>, vector<16x64xf32>,
    %c0_10 = arith.constant 0 : index
    %c0_11 = arith.constant 0 : index
    %10 = vector.load %arg3[%c0_10, %c0_11] : memref<64x32xf32, #tpu.memory_space<vmem>>, vector<64x32xf32>
    %cst_12 = arith.constant dense<0.000000e+00> : vector<16x32xf32>
    %11 = tpu.matmul %8, %10, %cst_12 {dimension_numbers = #tpu.dot_dimension_numbers<[1], [0], [0], [1], [0, 0, 1, 1], [], []>} : vector<16x64xf32>, vector<64x32xf32>, vector<16x32xf32> -> vector<16x32xf32>
    %c0_13 = arith.constant 0 : index
    %c0_14 = arith.constant 0 : index
    %12 = vector.load %arg5[%c0_13, %c0_14] : memref<1x32xf32, #tpu.memory_space<vmem>>, vector<1x32xf32>
    %13 = vector.broadcast %12 : vector<1x32xf32> to vector<16x32xf32>
    %14 = arith.addf %11, %13 : vector<16x32xf32>
    %c0_15 = arith.constant 0 : index
    %c0_16 = arith.constant 0 : index
    %15 = vector.load %arg12[%c0_15, %c0_16] : memref<16x32xf32, #tpu.memory_space<vmem>>, vector<16x32xf32>
    tpu.vector_store %arg12[%c0_15, %c0_16], %14 {strides = array<i32>} : memref<16x32xf32, #tpu.memory_space<vmem>>, vector<16x32xf32>,
    %c0_17 = arith.constant 0 : index
    %c0_18 = arith.constant 0 : index
    %16 = vector.load %arg4[%c0_17, %c0_18] : memref<32x32xf32, #tpu.memory_space<vmem>>, vector<32x32xf32>
    %cst_19 = arith.constant 0.000000e+00 : f32
    %17 = vector.broadcast %cst_19 : f32 to vector<2x32xf32>
    %c0_20 = arith.constant 0 : index
    %c0_21 = arith.constant 0 : index
    %18 = vector.load %arg12[%c0_20, %c0_21] : memref<16x32xf32, #tpu.memory_space<vmem>>, vector<2x32xf32>
    %cst_22 = arith.constant dense<0.000000e+00> : vector<2x32xf32>
    %19 = tpu.matmul %17, %16, %cst_22 {dimension_numbers = #tpu.dot_dimension_numbers<[1], [0], [0], [1], [0, 0, 1, 1], [], []>} : vector<2x32xf32>, vector<32x32xf32>, vector<2x32xf32> -> vector<2x32xf32>
    %20 = arith.addf %18, %19 : vector<2x32xf32>
    %cst_23 = arith.constant 0.000000e+00 : f32
    %21 = vector.broadcast %cst_23 : f32 to vector<2x32xf32>
    %22 = arith.maximumf %20, %21 : vector<2x32xf32>
    %c0_24 = arith.constant 0 : index
    %c0_25 = arith.constant 0 : index
    %23 = vector.load %arg10[%c0_24, %c0_25] : memref<16x32xf32, #tpu.memory_space<vmem>>, vector<2x32xf32>
    tpu.vector_store %arg10[%c0_24, %c0_25], %22 {strides = array<i32>} : memref<16x32xf32, #tpu.memory_space<vmem>>, vector<2x32xf32>,
    %c2 = arith.constant 2 : index
    %c0_26 = arith.constant 0 : index
    %24 = vector.load %arg12[%c2, %c0_26] : memref<16x32xf32, #tpu.memory_space<vmem>>, vector<2x32xf32>
    %cst_27 = arith.constant dense<0.000000e+00> : vector<2x32xf32>
    %25 = tpu.matmul %22, %16, %cst_27 {dimension_numbers = #tpu.dot_dimension_numbers<[1], [0], [0], [1], [0, 0, 1, 1], [], []>} : vector<2x32xf32>, vector<32x32xf32>, vector<2x32xf32> -> vector<2x32xf32>
    %26 = arith.addf %24, %25 : vector<2x32xf32>
    %cst_28 = arith.constant 0.000000e+00 : f32
    %27 = vector.broadcast %cst_28 : f32 to vector<2x32xf32>
    %28 = arith.maximumf %26, %27 : vector<2x32xf32>
    %c2_29 = arith.constant 2 : index
    %c0_30 = arith.constant 0 : index
    %29 = vector.load %arg10[%c2_29, %c0_30] : memref<16x32xf32, #tpu.memory_space<vmem>>, vector<2x32xf32>
    tpu.vector_store %arg10[%c2_29, %c0_30], %28 {strides = array<i32>} : memref<16x32xf32, #tpu.memory_space<vmem>>, vector<2x32xf32>,
    %c4 = arith.constant 4 : index
    %c0_31 = arith.constant 0 : index
    %30 = vector.load %arg12[%c4, %c0_31] : memref<16x32xf32, #tpu.memory_space<vmem>>, vector<2x32xf32>
    %cst_32 = arith.constant dense<0.000000e+00> : vector<2x32xf32>
    %31 = tpu.matmul %28, %16, %cst_32 {dimension_numbers = #tpu.dot_dimension_numbers<[1], [0], [0], [1], [0, 0, 1, 1], [], []>} : vector<2x32xf32>, vector<32x32xf32>, vector<2x32xf32> -> vector<2x32xf32>
    %32 = arith.addf %30, %31 : vector<2x32xf32>
    %cst_33 = arith.constant 0.000000e+00 : f32
    %33 = vector.broadcast %cst_33 : f32 to vector<2x32xf32>
    %34 = arith.maximumf %32, %33 : vector<2x32xf32>
    %c4_34 = arith.constant 4 : index
    %c0_35 = arith.constant 0 : index
    %35 = vector.load %arg10[%c4_34, %c0_35] : memref<16x32xf32, #tpu.memory_space<vmem>>, vector<2x32xf32>
    tpu.vector_store %arg10[%c4_34, %c0_35], %34 {strides = array<i32>} : memref<16x32xf32, #tpu.memory_space<vmem>>, vector<2x32xf32>,
    %c6 = arith.constant 6 : index
    %c0_36 = arith.constant 0 : index
    %36 = vector.load %arg12[%c6, %c0_36] : memref<16x32xf32, #tpu.memory_space<vmem>>, vector<2x32xf32>
    %cst_37 = arith.constant dense<0.000000e+00> : vector<2x32xf32>
    %37 = tpu.matmul %34, %16, %cst_37 {dimension_numbers = #tpu.dot_dimension_numbers<[1], [0], [0], [1], [0, 0, 1, 1], [], []>} : vector<2x32xf32>, vector<32x32xf32>, vector<2x32xf32> -> vector<2x32xf32>
    %38 = arith.addf %36, %37 : vector<2x32xf32>
    %cst_38 = arith.constant 0.000000e+00 : f32
    %39 = vector.broadcast %cst_38 : f32 to vector<2x32xf32>
    %40 = arith.maximumf %38, %39 : vector<2x32xf32>
    %c6_39 = arith.constant 6 : index
    %c0_40 = arith.constant 0 : index
    %41 = vector.load %arg10[%c6_39, %c0_40] : memref<16x32xf32, #tpu.memory_space<vmem>>, vector<2x32xf32>
    tpu.vector_store %arg10[%c6_39, %c0_40], %40 {strides = array<i32>} : memref<16x32xf32, #tpu.memory_space<vmem>>, vector<2x32xf32>,
    %c8 = arith.constant 8 : index
    %c0_41 = arith.constant 0 : index
    %42 = vector.load %arg12[%c8, %c0_41] : memref<16x32xf32, #tpu.memory_space<vmem>>, vector<2x32xf32>
    %cst_42 = arith.constant dense<0.000000e+00> : vector<2x32xf32>
    %43 = tpu.matmul %40, %16, %cst_42 {dimension_numbers = #tpu.dot_dimension_numbers<[1], [0], [0], [1], [0, 0, 1, 1], [], []>} : vector<2x32xf32>, vector<32x32xf32>, vector<2x32xf32> -> vector<2x32xf32>
    %44 = arith.addf %42, %43 : vector<2x32xf32>
    %cst_43 = arith.constant 0.000000e+00 : f32
    %45 = vector.broadcast %cst_43 : f32 to vector<2x32xf32>
    %46 = arith.maximumf %44, %45 : vector<2x32xf32>
    %c8_44 = arith.constant 8 : index
    %c0_45 = arith.constant 0 : index
    %47 = vector.load %arg10[%c8_44, %c0_45] : memref<16x32xf32, #tpu.memory_space<vmem>>, vector<2x32xf32>
    tpu.vector_store %arg10[%c8_44, %c0_45], %46 {strides = array<i32>} : memref<16x32xf32, #tpu.memory_space<vmem>>, vector<2x32xf32>,
    %c10 = arith.constant 10 : index
    %c0_46 = arith.constant 0 : index
    %48 = vector.load %arg12[%c10, %c0_46] : memref<16x32xf32, #tpu.memory_space<vmem>>, vector<2x32xf32>
    %cst_47 = arith.constant dense<0.000000e+00> : vector<2x32xf32>
    %49 = tpu.matmul %46, %16, %cst_47 {dimension_numbers = #tpu.dot_dimension_numbers<[1], [0], [0], [1], [0, 0, 1, 1], [], []>} : vector<2x32xf32>, vector<32x32xf32>, vector<2x32xf32> -> vector<2x32xf32>
    %50 = arith.addf %48, %49 : vector<2x32xf32>
    %cst_48 = arith.constant 0.000000e+00 : f32
    %51 = vector.broadcast %cst_48 : f32 to vector<2x32xf32>
    %52 = arith.maximumf %50, %51 : vector<2x32xf32>
    %c10_49 = arith.constant 10 : index
    %c0_50 = arith.constant 0 : index
    %53 = vector.load %arg10[%c10_49, %c0_50] : memref<16x32xf32, #tpu.memory_space<vmem>>, vector<2x32xf32>
    tpu.vector_store %arg10[%c10_49, %c0_50], %52 {strides = array<i32>} : memref<16x32xf32, #tpu.memory_space<vmem>>, vector<2x32xf32>,
    %c12 = arith.constant 12 : index
    %c0_51 = arith.constant 0 : index
    %54 = vector.load %arg12[%c12, %c0_51] : memref<16x32xf32, #tpu.memory_space<vmem>>, vector<2x32xf32>
    %cst_52 = arith.constant dense<0.000000e+00> : vector<2x32xf32>
    %55 = tpu.matmul %52, %16, %cst_52 {dimension_numbers = #tpu.dot_dimension_numbers<[1], [0], [0], [1], [0, 0, 1, 1], [], []>} : vector<2x32xf32>, vector<32x32xf32>, vector<2x32xf32> -> vector<2x32xf32>
    %56 = arith.addf %54, %55 : vector<2x32xf32>
    %cst_53 = arith.constant 0.000000e+00 : f32
    %57 = vector.broadcast %cst_53 : f32 to vector<2x32xf32>
    %58 = arith.maximumf %56, %57 : vector<2x32xf32>
    %c12_54 = arith.constant 12 : index
    %c0_55 = arith.constant 0 : index
    %59 = vector.load %arg10[%c12_54, %c0_55] : memref<16x32xf32, #tpu.memory_space<vmem>>, vector<2x32xf32>
    tpu.vector_store %arg10[%c12_54, %c0_55], %58 {strides = array<i32>} : memref<16x32xf32, #tpu.memory_space<vmem>>, vector<2x32xf32>,
    %c14 = arith.constant 14 : index
    %c0_56 = arith.constant 0 : index
    %60 = vector.load %arg12[%c14, %c0_56] : memref<16x32xf32, #tpu.memory_space<vmem>>, vector<2x32xf32>
    %cst_57 = arith.constant dense<0.000000e+00> : vector<2x32xf32>
    %61 = tpu.matmul %58, %16, %cst_57 {dimension_numbers = #tpu.dot_dimension_numbers<[1], [0], [0], [1], [0, 0, 1, 1], [], []>} : vector<2x32xf32>, vector<32x32xf32>, vector<2x32xf32> -> vector<2x32xf32>
    %62 = arith.addf %60, %61 : vector<2x32xf32>
    %cst_58 = arith.constant 0.000000e+00 : f32
    %63 = vector.broadcast %cst_58 : f32 to vector<2x32xf32>
    %64 = arith.maximumf %62, %63 : vector<2x32xf32>
    %c14_59 = arith.constant 14 : index
    %c0_60 = arith.constant 0 : index
    %65 = vector.load %arg10[%c14_59, %c0_60] : memref<16x32xf32, #tpu.memory_space<vmem>>, vector<2x32xf32>
    tpu.vector_store %arg10[%c14_59, %c0_60], %64 {strides = array<i32>} : memref<16x32xf32, #tpu.memory_space<vmem>>, vector<2x32xf32>,
    %c0_61 = arith.constant 0 : index
    %c0_62 = arith.constant 0 : index
    %66 = vector.load %arg10[%c0_61, %c0_62] : memref<16x32xf32, #tpu.memory_space<vmem>>, vector<16x32xf32>
    %c0_63 = arith.constant 0 : index
    %c0_64 = arith.constant 0 : index
    %67 = vector.load %arg6[%c0_63, %c0_64] : memref<32x2xf32, #tpu.memory_space<vmem>>, vector<32x2xf32>
    %cst_65 = arith.constant dense<0.000000e+00> : vector<16x2xf32>
    %68 = tpu.matmul %66, %67, %cst_65 {dimension_numbers = #tpu.dot_dimension_numbers<[1], [0], [0], [1], [0, 0, 1, 1], [], []>} : vector<16x32xf32>, vector<32x2xf32>, vector<16x2xf32> -> vector<16x2xf32>
    %c0_66 = arith.constant 0 : index
    %c0_67 = arith.constant 0 : index
    %69 = vector.load %arg7[%c0_66, %c0_67] : memref<1x2xf32, #tpu.memory_space<vmem>>, vector<1x2xf32>
    %70 = vector.broadcast %69 : vector<1x2xf32> to vector<16x2xf32>
    %71 = arith.addf %68, %70 : vector<16x2xf32>
    %c0_68 = arith.constant 0 : index
    %c0_69 = arith.constant 0 : index
    %72 = vector.load %arg11[%c0_68, %c0_69] : memref<16x2xf32, #tpu.memory_space<vmem>>, vector<16x2xf32>
    tpu.vector_store %arg11[%c0_68, %c0_69], %71 {strides = array<i32>} : memref<16x2xf32, #tpu.memory_space<vmem>>, vector<16x2xf32>,
    return
  }
}

</mosaic_0001>

<bundles_post_ra>
// kernel: model_n_forward.1
= control target key start
LH: loop header
LB: loop body
LE: loop exit
PB: predicated region body
PF: predicated region fallthrough
CT: control target
= control target key end

     0   :  { %vm201_vm0 = vcmask 523264   ;;  %vm249_vm1 = vcmask 261120   ;;  %vm282_vm2 = vcmask 254976   ;;  %vm512_vm3 = vcmask 15360   ;;  %s995_s1 = inlined_call_operand.vmem [shape: f32[512,64], index: 1, kind: input, shape index: {}]   ;;  %s996_s2 = inlined_call_operand.vmem [shape: f32[1,64], index: 2, kind: input, shape index: {}]   ;;  %s997_s0 = inlined_call_operand.vmem [shape: f32[16,512], index: 0, kind: input, shape index: {}]   ;;  %s998_s3 = inlined_call_operand.vmem [shape: f32[64,32], index: 3, kind: input, shape index: {}]   ;;  %s999_s4 = inlined_call_operand.vmem [shape: f32[32,32], index: 4, kind: input, shape index: {}]   ;;  %s1000_s5 = inlined_call_operand.vmem [shape: f32[1,32], index: 5, kind: input, shape index: {}]   ;;  %s1001_s8 = inlined_call_operand.vmem [shape: f32[16,64], index: 8, kind: output, shape index: {0}]   ;;  %s1002_s9 = inlined_call_operand.vmem [shape: f32[16,64], index: 9, kind: output, shape index: {1}]   ;;  %s1003_s10 = inlined_call_operand.vmem [shape: f32[16,32], index: 10, kind: output, shape index: {2}]   ;;  %s1004_s6 = inlined_call_operand.vmem [shape: f32[32,2], index: 6, kind: input, shape index: {}]   ;;  %s1005_s7 = inlined_call_operand.vmem [shape: f32[1,2], index: 7, kind: input, shape index: {}]   ;;  %s1006_s11 = inlined_call_operand.vmem [shape: f32[16,2], index: 11, kind: output, shape index: {3}]  }
   0x1   :  { %v88_v0 = vld [vmem:[%s995_s1 + $0x178] sm:$0xff]  ;;  %v87_v2 = vld [vmem:[%s995_s1 + $0x170] sm:$0xff]  ;;  %v86_v6 = vld [vmem:[%s995_s1 + $0x168] sm:$0xff] }
   0x2   :  { %v56_v1 = vld [vmem:[%s995_s1 + $0x78] sm:$0xff]  ;;  %155 = vmatpush.msra.mxu2 %v88_v0  ;;  %v55_v4 = vld [vmem:[%s995_s1 + $0x70] sm:$0xff]  ;;  %v54_v8 = vld [vmem:[%s995_s1 + $0x68] sm:$0xff] }
   0x3   :  { %109 = vmatpush.msra.mxu0 %v56_v1  ;;  %v104_v3 = vld [vmem:[%s995_s1 + $0x1f8] sm:$0xff]  ;;  %v103_v7 = vld [vmem:[%s995_s1 + $0x1f0] sm:$0xff]  ;;  %v102_v10 = vld [vmem:[%s995_s1 + $0x1e8] sm:$0xff] }
   0x4   :  { %v72_v5 = vld [vmem:[%s995_s1 + $0xf8] sm:$0xff]  ;;  %178 = vmatpush.msra.mxu3 %v104_v3  ;;  %156 = vmatpush.msra.mxu2 %v87_v2  ;;  %v71_v9 = vld [vmem:[%s995_s1 + $0xf0] sm:$0xff]  ;;  %v85_v11 = vld [vmem:[%s995_s1 + $0x160] sm:$0xff] }
   0x5   :  { %132 = vmatpush.msra.mxu1 %v72_v5  ;;  %110 = vmatpush.msra.mxu0 %v55_v4  ;;  %v53_v12 = vld [vmem:[%s995_s1 + $0x60] sm:$0xff]  ;;  %v70_v13 = vld [vmem:[%s995_s1 + $0xe8] sm:$0xff]  ;;  %v84_v16 = vld [vmem:[%s995_s1 + $0x158] sm:$0xff] }
   0x6   :  { %179 = vmatpush.msra.mxu3 %v103_v7  ;;  %157 = vmatpush.msra.mxu2 %v86_v6  ;;  %v101_v14 = vld [vmem:[%s995_s1 + $0x1e0] sm:$0xff]  ;;  %v52_v17 = vld [vmem:[%s995_s1 + $0x58] sm:$0xff]  ;;  %v83_v20 = vld [vmem:[%s995_s1 + $0x150] sm:$0xff] }
   0x7   :  { %133 = vmatpush.msra.mxu1 %v71_v9  ;;  %111 = vmatpush.msra.mxu0 %v54_v8  ;;  %v69_v15 = vld [vmem:[%s995_s1 + $0xe0] sm:$0xff]  ;;  %v100_v18 = vld [vmem:[%s995_s1 + $0x1d8] sm:$0xff]  ;;  %v51_v21 = vld [vmem:[%s995_s1 + $0x50] sm:$0xff] }
   0x8   :  { %180 = vmatpush.msra.mxu3 %v102_v10  ;;  %158 = vmatpush.msra.mxu2 %v85_v11  ;;  %v68_v19 = vld [vmem:[%s995_s1 + $0xd8] sm:$0xff]  ;;  %v99_v22 = vld [vmem:[%s995_s1 + $0x1d0] sm:$0xff]  ;;  %v82_v24 = vld [vmem:[%s995_s1 + $0x148] sm:$0xff] }
   0x9   :  { %134 = vmatpush.msra.mxu1 %v70_v13  ;;  %112 = vmatpush.msra.mxu0 %v53_v12  ;;  %v67_v23 = vld [vmem:[%s995_s1 + $0xd0] sm:$0xff]  ;;  %v50_v25 = vld [vmem:[%s995_s1 + $0x48] sm:$0xff]  ;;  %v81_v28 = vld [vmem:[%s995_s1 + $0x140] sm:$0xff] }
   0xa   :  { %181 = vmatpush.msra.mxu3 %v101_v14  ;;  %159 = vmatpush.msra.mxu2 %v84_v16  ;;  %v98_v26 = vld [vmem:[%s995_s1 + $0x1c8] sm:$0xff]  ;;  %v49_v29 = vld [vmem:[%s995_s1 + $0x40] sm:$0xff]  ;;  %v80_v32 = vld [vmem:[%s995_s1 + $0x138] sm:$0xff] }
   0xb   :  { %135 = vmatpush.msra.mxu1 %v69_v15  ;;  %113 = vmatpush.msra.mxu0 %v52_v17  ;;  %v66_v27 = vld [vmem:[%s995_s1 + $0xc8] sm:$0xff]  ;;  %v97_v30 = vld [vmem:[%s995_s1 + $0x1c0] sm:$0xff]  ;;  %v48_v33 = vld [vmem:[%s995_s1 + $0x38] sm:$0xff] }
   0xc   :  { %182 = vmatpush.msra.mxu3 %v100_v18  ;;  %160 = vmatpush.msra.mxu2 %v83_v20  ;;  %v65_v31 = vld [vmem:[%s995_s1 + $0xc0] sm:$0xff]  ;;  %v96_v34 = vld [vmem:[%s995_s1 + $0x1b8] sm:$0xff]  ;;  %v79_v36 = vld [vmem:[%s995_s1 + $0x130] sm:$0xff]  ;;  %v546_v20 = vmov 0.0  }
   0xd   :  { %136 = vmatpush.msra.mxu1 %v68_v19  ;;  %114 = vmatpush.msra.mxu0 %v51_v21  ;;  %v64_v35 = vld [vmem:[%s995_s1 + $0xb8] sm:$0xff]  ;;  %v47_v37 = vld [vmem:[%s995_s1 + $0x30] sm:$0xff]  ;;  %v78_v40 = vld [vmem:[%s995_s1 + $0x128] sm:$0xff] }
   0xe   :  { %183 = vmatpush.msra.mxu3 %v99_v22  ;;  %161 = vmatpush.msra.mxu2 %v82_v24  ;;  %v95_v38 = vld [vmem:[%s995_s1 + $0x1b0] sm:$0xff]  ;;  %v46_v41 = vld [vmem:[%s995_s1 + $0x28] sm:$0xff]  ;;  %v77_v44 = vld [vmem:[%s995_s1 + $0x120] sm:$0xff] }
   0xf   :  { %137 = vmatpush.msra.mxu1 %v67_v23  ;;  %115 = vmatpush.msra.mxu0 %v50_v25  ;;  %v63_v39 = vld [vmem:[%s995_s1 + $0xb0] sm:$0xff]  ;;  %v94_v42 = vld [vmem:[%s995_s1 + $0x1a8] sm:$0xff]  ;;  %v45_v45 = vld [vmem:[%s995_s1 + $0x20] sm:$0xff] }
  0x10   :  { %184 = vmatpush.msra.mxu3 %v98_v26  ;;  %162 = vmatpush.msra.mxu2 %v81_v28  ;;  %v62_v43 = vld [vmem:[%s995_s1 + $0xa8] sm:$0xff]  ;;  %v93_v46 = vld [vmem:[%s995_s1 + $0x1a0] sm:$0xff]  ;;  %v76_v48 = vld [vmem:[%s995_s1 + $0x118] sm:$0xff] }
  0x11   :  { %138 = vmatpush.msra.mxu1 %v66_v27  ;;  %116 = vmatpush.msra.mxu0 %v49_v29  ;;  %v61_v47 = vld [vmem:[%s995_s1 + $0xa0] sm:$0xff]  ;;  %v44_v49 = vld [vmem:[%s995_s1 + $0x18] sm:$0xff]  ;;  %v75_v52 = vld [vmem:[%s995_s1 + $0x110] sm:$0xff] }
  0x12   :  { %185 = vmatpush.msra.mxu3 %v97_v30  ;;  %163 = vmatpush.msra.mxu2 %v80_v32  ;;  %v92_v50 = vld [vmem:[%s995_s1 + $0x198] sm:$0xff]  ;;  %v43_v53 = vld [vmem:[%s995_s1 + $0x10] sm:$0xff]  ;;  %v74_v56 = vld [vmem:[%s995_s1 + $0x108] sm:$0xff] }
  0x13   :  { %139 = vmatpush.msra.mxu1 %v65_v31  ;;  %117 = vmatpush.msra.mxu0 %v48_v33  ;;  %v60_v51 = vld [vmem:[%s995_s1 + $0x98] sm:$0xff]  ;;  %v91_v54 = vld [vmem:[%s995_s1 + $0x190] sm:$0xff]  ;;  %v42_v57 = vld [vmem:[%s995_s1 + $0x8] sm:$0xff] }
  0x14   :  { %186 = vmatpush.msra.mxu3 %v96_v34  ;;  %164 = vmatpush.msra.mxu2 %v79_v36  ;;  %v59_v55 = vld [vmem:[%s995_s1 + $0x90] sm:$0xff]  ;;  %v90_v58 = vld [vmem:[%s995_s1 + $0x188] sm:$0xff]  ;;  %v73_v60 = vld [vmem:[%s995_s1 + $0x100] sm:$0xff] }
  0x15   :  { %140 = vmatpush.msra.mxu1 %v64_v35  ;;  %118 = vmatpush.msra.mxu0 %v47_v37  ;;  %v58_v59 = vld [vmem:[%s995_s1 + $0x88] sm:$0xff]  ;;  %v41_v61 = vld [vmem:[%s995_s1] sm:$0xff]  ;;  %v35_v62 = vld [vmem:[%s997_s0 + $0x10] sm:$0xff] }
  0x16   :  { %187 = vmatpush.msra.mxu3 %v95_v38  ;;  %165 = vmatpush.msra.mxu2 %v78_v40  ;;  %v89_v63 = vld [vmem:[%s995_s1 + $0x180] sm:$0xff]  ;;  %v36_v1 = vld [vmem:[%s997_s0 + $0x18] sm:$0xff]  ;;  %v34_v4 = vld [vmem:[%s997_s0 + $0x8] sm:$0xff] }
  0x17   :  { %141 = vmatpush.msra.mxu1 %v63_v39  ;;  %119 = vmatpush.msra.mxu0 %v46_v41  ;;  %v33_v0 = vld [vmem:[%s997_s0] sm:$0xff]  ;;  %v215_v3 = vld [vmem:[%s998_s3 + $0x38] sm:$0xff]  ;;  %v214_v5 = vld [vmem:[%s998_s3 + $0x30] sm:$0xff] }
  0x18   :  { %188 = vmatpush.msra.mxu3 %v94_v42  ;;  %166 = vmatpush.msra.mxu2 %v77_v44  ;;  %v57_v2 = vld [vmem:[%s995_s1 + $0x80] sm:$0xff]  ;;  %v213_v6 = vld [vmem:[%s998_s3 + $0x28] sm:$0xff]  ;;  %v39_v7 = vld [vmem:[%s997_s0 + $0x30] sm:$0xff] }
  0x19   :  { %142 = vmatpush.msra.mxu1 %v62_v43  ;;  %120 = vmatpush.msra.mxu0 %v45_v45  ;;  %v212_v8 = vld [vmem:[%s998_s3 + $0x20] sm:$0xff]  ;;  %v40_v10 = vld [vmem:[%s997_s0 + $0x38] sm:$0xff]  ;;  %v38_v12 = vld [vmem:[%s997_s0 + $0x28] sm:$0xff] }
  0x1a   :  { %189 = vmatpush.msra.mxu3 %v93_v46  ;;  %167 = vmatpush.msra.mxu2 %v76_v48  ;;  %v37_v9 = vld [vmem:[%s997_s0 + $0x20] sm:$0xff]  ;;  %v211_v11 = vld [vmem:[%s998_s3 + $0x18] sm:$0xff]  ;;  %v210_v13 = vld [vmem:[%s998_s3 + $0x10] sm:$0xff] }
  0x1b   :  { %143 = vmatpush.msra.mxu1 %v61_v47  ;;  %121 = vmatpush.msra.mxu0 %v44_v49  ;;  %v844_v14 = vld [vmem:[%s999_s4 + $0x18] sm:$0xff]  ;;  %v209_v15 = vld [vmem:[%s998_s3 + $0x8] sm:$0xff]  ;;  %v208_v16 = vld [vmem:[%s998_s3] sm:$0xff] }
  0x1c   :  { %190 = vmatpush.msra.mxu3 %v92_v50  ;;  %168 = vmatpush.msra.mxu2 %v75_v52  ;;  %v858_v17 = vld [vmem:[%s999_s4 + $0x10] sm:$0xff]  ;;  %v863_v18 = vld [vmem:[%s999_s4 + $0x8] sm:$0xff]  ;;  %v871_v19 = vld [vmem:[%s999_s4] sm:$0xff] }
  0x1d   :  { %144 = vmatpush.msra.mxu1 %v60_v51  ;;  %122 = vmatpush.msra.mxu0 %v43_v53  ;;  %v543_v21 = vld [vmem:[%s996_s2] ss:$0 sm:$0xff] }
  0x1e   :  { %191 = vmatpush.msra.mxu3 %v91_v54  ;;  %169 = vmatpush.msra.mxu2 %v74_v56  ;;  %v544_v40 = vld [vmem:[%s1000_s5] ss:$0 sm:$0xff] }
  0x1f   :  { %145 = vmatpush.msra.mxu1 %v59_v55  ;;  %123 = vmatpush.msra.mxu0 %v42_v57  ;;  %v478_v57 = vld [vmem:[%s1004_s6 + $0x18] sm:$0xff] }
  0x20   :  { %192 = vmatpush.msra.mxu3 %v90_v58  ;;  %170 = vmatpush.msra.mxu2 %v73_v60  ;;  %v477_v58 = vld [vmem:[%s1004_s6 + $0x10] sm:$0xff]  ;;  %v475_v60 = vld [vmem:[%s1004_s6] sm:$0xff] }
  0x21   :  { %146 = vmatpush.msra.mxu1 %v58_v59  ;;  %124 = vmatpush.msra.mxu0 %v41_v61  ;;  %v476_v59 = vld [vmem:[%s1004_s6 + $0x8] sm:$0xff] }
  0x22   :  { %171 = vmatmul.f32.vlgmr.msra.gmra.mxu2 %v35_v62  ;;  %193 = vmatpush.msra.mxu3 %v89_v63 }
  0x23   :  { %125 = vmatmul.f32.vlgmr.msra.gmra.mxu0 %v33_v0  ;;  %194 = vmatmul.f32.vlgmr.msra.gmra.mxu3 %v36_v1 }
  0x24   :  { %147 = vmatpush.msra.mxu1 %v57_v2  ;;  %234 = vmatpush.msrb.mxu0 %v215_v3 }
  0x25   :  { %148 = vmatmul.f32.vlgmr.msra.gmra.mxu1 %v34_v4  ;;  %300 = vmatpush.msrb.mxu3 %v844_v14 }
  0x26   :  { %235 = vmatpush.msrb.mxu0 %v214_v5  ;;  %272 = vmatpush.msrb.mxu1 %v844_v14 }
  0x27   :  { %381 = vmatpush.msrb.mxu2 %v844_v14  ;;  %301 = vmatpush.msrb.mxu3 %v858_v17 }
  0x28   :  { %236 = vmatpush.msrb.mxu0 %v213_v6  ;;  %273 = vmatpush.msrb.mxu1 %v858_v17  ;;  %v545_v6 = vld [vmem:[%s1005_s7] ss:$0 sm:$0xff] }
  0x29   :  { %382 = vmatpush.msrb.mxu2 %v858_v17  ;;  %302 = vmatpush.msrb.mxu3 %v863_v18 }
  0x2a   :  { %174 = vmatmul.f32.gmra.mxu2 %v39_v7  ;;  %237 = vmatpush.msrb.mxu0 %v212_v8 }
  0x2b   :  { %128 = vmatmul.f32.gmra.mxu0 %v37_v9  ;;  %197 = vmatmul.f32.gmra.mxu3 %v40_v10 }
  0x2c   :  { %238 = vmatpush.msrb.mxu0 %v211_v11  ;;  %274 = vmatpush.msrb.mxu1 %v863_v18 }
  0x2d   :  { %151 = vmatmul.f32.gmra.mxu1 %v38_v12  ;;  %383 = vmatpush.msrb.mxu2 %v863_v18 }
  0x2e   :  { %239 = vmatpush.msrb.mxu0 %v210_v13  ;;  %275 = vmatpush.msrb.mxu1 %v871_v19 }
  0x2f   :  { %303 = vmatpush.msrb.mxu3 %v871_v19  ;;  %384 = vmatpush.msrb.mxu2 %v871_v19 }
  0x30   :  { %240 = vmatpush.msrb.mxu0 %v209_v15  ;;  %354 = vmatpush.msra.mxu1 %v844_v14 }
  0x31   :  { %327 = vmatpush.msra.mxu3 %v844_v14  ;;  %501 = vmatpush.msra.mxu2 %v478_v57 }
  0x32   :  { %241 = vmatpush.msrb.mxu0 %v208_v16  ;;  %355 = vmatpush.msra.mxu1 %v858_v17 }
  0x33   :  { %328 = vmatpush.msra.mxu3 %v858_v17  ;;  %502 = vmatpush.msra.mxu2 %v477_v58 }
  0x34   :  { %435 = vmatpush.msra.mxu0 %v844_v14  ;;  %356 = vmatpush.msra.mxu1 %v863_v18 }
  0x35   :  { %276 = vmatmul.f32.vlgmr.msrb.gmra.mxu1 %v546_v20  ;;  %329 = vmatpush.msra.mxu3 %v863_v18 }
  0x36   :  { %436 = vmatpush.msra.mxu0 %v858_v17  ;;  %357 = vmatpush.msra.mxu1 %v871_v19 }
  0x37   :  { %330 = vmatpush.msra.mxu3 %v871_v19  ;;  %503 = vmatpush.msra.mxu2 %v476_v59 }
  0x38   :  { %437 = vmatpush.msra.mxu0 %v863_v18  ;;  %462 = vmatpush.msrb.mxu1 %v844_v14 }
  0x39   :  { %504 = vmatpush.msra.mxu2 %v475_v60 }
  0x3a   :  { %438 = vmatpush.msra.mxu0 %v871_v19  ;;  %463 = vmatpush.msrb.mxu1 %v858_v17 }
  0x3c   :  { %464 = vmatpush.msrb.mxu1 %v863_v18 }
  0x3e   :  { %465 = vmatpush.msrb.mxu1 %v871_v19 }
  0xa0   :  { %v126_v22 = vpop.f32.mrf.mxu0 }
  0xa1   :  { %v127_v23 = vadd.f32 %v543_v21, %v126_v22 }
  0xa2   :  { %v149_v24 = vpop.f32.mrf.mxu1 }
  0xa3   :  { %v150_v25 = vadd.f32 %v149_v24, %v127_v23 }
  0xa5   :  { %v172_v26 = vpop.f32.mrf.mxu2 }
  0xa6   :  { %v173_v27 = vadd.f32 %v172_v26, %v150_v25  ;;  %v195_v28 = vpop.f32.mrf.mxu3 }
  0xa8   :  { %v196_v29 = vadd.f32 %v195_v28, %v173_v27  ;;  %v129_v31 = vpop.f32.mrf.mxu0 }
  0xa9   :  { %v130_v32 = vadd.f32 %v543_v21, %v129_v31 }
  0xaa   :  { %202 = vst.msk [vmem:[%s1001_s8] sm:$0xff] %vm201_vm0, %v196_v29  ;;  %v204_v30 = vmax.f32 %v196_v29, 0.0  ;;  %v152_v33 = vpop.f32.mrf.mxu1 }
  0xab   :  { %v153_v34 = vadd.f32 %v152_v33, %v130_v32 }
  0xac   :  { %206 = vst.msk [vmem:[%s1002_s9] sm:$0xff] %vm201_vm0, %v204_v30  ;;  %531 = vmatmul.msk.f32.vlgmr.msrb.gmra.mxu0 %vm201_vm0, %v204_v30 }
  0xad   :  { %v175_v35 = vpop.f32.mrf.mxu2 }
  0xae   :  { %v176_v36 = vadd.f32 %v175_v35, %v153_v34  ;;  %v198_v37 = vpop.f32.mrf.mxu3 }
  0xb0   :  { %v199_v38 = vadd.f32 %v198_v37, %v176_v36 }
  0xb2   :  { %203 = vst.msk [vmem:[%s1001_s8 + $0x8] sm:$0xff] %vm201_vm0, %v199_v38  ;;  %v205_v39 = vmax.f32 %v199_v38, 0.0  ;;  %v277_v43 = vpop.f32.mrf.mxu1 }
  0xb4   :  { %207 = vst.msk [vmem:[%s1002_s9 + $0x8] sm:$0xff] %vm201_vm0, %v205_v39  ;;  %532 = vmatmul.msk.f32.gmra.mxu0 %vm201_vm0, %v205_v39 }
 0x129   :  { %v243_v41 = vpop.f32.mrf.mxu0 }
 0x12a   :  { %v244_v42 = vadd.f32 %v544_v40, %v243_v41 }
 0x12c   :  { %250 = vst.msk [vmem:[#allocation2] sm:$0xff] %vm249_vm1, %v244_v42 }
 0x131   :  { %v246_v47 = vpop.f32.mrf.mxu0 }
 0x132   :  { %v247_v48 = vadd.f32 %v544_v40, %v246_v47 }
 0x133   :  { %v256_v44 = vld [vmem:[#allocation2] sm:$0x3]  ;;  %v284_v49 = vld [vmem:[#allocation2 + $0x2] sm:$0x3]  ;;  %v311_v53 = vld [vmem:[#allocation2 + $0x4] sm:$0x3] }
 0x134   :  { %v280_v45 = vadd.f32 %v277_v43, %v256_v44  ;;  %251 = vst.msk [vmem:[#allocation2 + $0x8] sm:$0xff] %vm249_vm1, %v247_v48  ;;  %v338_v61 = vld [vmem:[#allocation2 + $0x6] sm:$0x3] }
 0x136   :  { %v281_v46 = vmax.f32 %v280_v45, 0.0 }
 0x138   :  { %283 = vst.msk [vmem:[%s1003_s10] sm:$0x3] %vm282_vm2, %v281_v46  ;;  %533 = vmatmul.msk.f32.vlgmr.msrb.gmra.mxu3 %vm249_vm1, %v281_v46 }
 0x139   :  { %408 = vmatpush.msrb.mxu3 %v844_v14 }
 0x13b   :  { %409 = vmatpush.msrb.mxu3 %v858_v17  ;;  %v365_v2 = vld [vmem:[#allocation2 + $0x8] sm:$0x3]  ;;  %v392_v9 = vld [vmem:[#allocation2 + $0xa] sm:$0x3]  ;;  %v419_v13 = vld [vmem:[#allocation2 + $0xc] sm:$0x3] }
 0x13c   :  { %v446_v17 = vld [vmem:[#allocation2 + $0xe] sm:$0x3] }
 0x13d   :  { %410 = vmatpush.msrb.mxu3 %v863_v18 }
 0x13f   :  { %411 = vmatpush.msrb.mxu3 %v871_v19 }
 0x1bb   :  { %v305_v50 = vpop.f32.mrf.mxu3 }
 0x1bc   :  { %v308_v51 = vadd.f32 %v305_v50, %v284_v49 }
 0x1be   :  { %v309_v52 = vmax.f32 %v308_v51, 0.0 }
 0x1c0   :  { %310 = vst.msk [vmem:[%s1003_s10 + $0x2] sm:$0x3] %vm282_vm2, %v309_v52  ;;  %534 = vmatmul.msk.f32.vlgmr.msra.gmra.mxu3 %vm249_vm1, %v309_v52 }
 0x243   :  { %v332_v54 = vpop.f32.mrf.mxu3 }
 0x244   :  { %v335_v55 = vadd.f32 %v332_v54, %v311_v53 }
 0x246   :  { %v336_v56 = vmax.f32 %v335_v55, 0.0 }
 0x248   :  { %337 = vst.msk [vmem:[%s1003_s10 + $0x4] sm:$0x3] %vm282_vm2, %v336_v56  ;;  %535 = vmatmul.msk.f32.vlgmr.msra.gmra.mxu1 %vm249_vm1, %v336_v56 }
 0x2c5   :  { %v359_v62 = vpop.f32.mrf.mxu1 }
 0x2c6   :  { %v362_v63 = vadd.f32 %v359_v62, %v338_v61 }
 0x2c8   :  { %v363_v0 = vmax.f32 %v362_v63, 0.0 }
 0x2ca   :  { %364 = vst.msk [vmem:[%s1003_s10 + $0x6] sm:$0x3] %vm282_vm2, %v363_v0  ;;  %536 = vmatmul.msk.f32.vlgmr.msrb.gmra.mxu2 %vm249_vm1, %v363_v0 }
 0x2d1   :  { %v473_v1 = vld [vmem:[%s1003_s10] sm:$0xff] }
 0x2d2   :  { %540 = vmatmul.msk.f32.vlgmr.msra.gmra.mxu2 %vm249_vm1, %v473_v1 }
 0x34d   :  { %v386_v3 = vpop.f32.mrf.mxu2 }
 0x34e   :  { %v389_v4 = vadd.f32 %v386_v3, %v365_v2 }
 0x350   :  { %v390_v5 = vmax.f32 %v389_v4, 0.0 }
 0x352   :  { %391 = vst.msk [vmem:[%s1003_s10 + $0x8] sm:$0x3] %vm282_vm2, %v390_v5  ;;  %537 = vmatmul.msk.f32.vlgmr.msrb.gmra.mxu3 %vm249_vm1, %v390_v5 }
 0x355   :  { %v506_v7 = vpop.f32.mrf.mxu2 }
 0x356   :  { %v507_v8 = vadd.f32 %v545_v6, %v506_v7 }
 0x358   :  { %513 = vst.msk [vmem:[%s1006_s11] sm:$0xff] %vm512_vm3, %v507_v8 }
 0x3d5   :  { %v413_v10 = vpop.f32.mrf.mxu3 }
 0x3d6   :  { %v416_v11 = vadd.f32 %v413_v10, %v392_v9 }
 0x3d8   :  { %v417_v12 = vmax.f32 %v416_v11, 0.0 }
 0x3da   :  { %418 = vst.msk [vmem:[%s1003_s10 + $0xa] sm:$0x3] %vm282_vm2, %v417_v12  ;;  %538 = vmatmul.msk.f32.vlgmr.msra.gmra.mxu0 %vm249_vm1, %v417_v12 }
 0x457   :  { %v440_v14 = vpop.f32.mrf.mxu0 }
 0x458   :  { %v443_v15 = vadd.f32 %v440_v14, %v419_v13 }
 0x45a   :  { %v444_v16 = vmax.f32 %v443_v15, 0.0 }
 0x45c   :  { %445 = vst.msk [vmem:[%s1003_s10 + $0xc] sm:$0x3] %vm282_vm2, %v444_v16  ;;  %539 = vmatmul.msk.f32.vlgmr.msrb.gmra.mxu1 %vm249_vm1, %v444_v16 }
 0x4d9   :  { %v467_v18 = vpop.f32.mrf.mxu1 }
 0x4da   :  { %v470_v19 = vadd.f32 %v467_v18, %v446_v17 }
 0x4dc   :  { %v471_v20 = vmax.f32 %v470_v19, 0.0 }
 0x4de   :  { %472 = vst.msk [vmem:[%s1003_s10 + $0xe] sm:$0x3] %vm282_vm2, %v471_v20 }
 0x4e5   :  { %v474_v21 = vld [vmem:[%s1003_s10 + $0x8] sm:$0xff] }
 0x4e6   :  { %541 = vmatmul.msk.f32.gmra.mxu2 %vm249_vm1, %v474_v21 }
 0x569   :  { %v509_v22 = vpop.f32.mrf.mxu2 }
 0x56a   :  { %v510_v23 = vadd.f32 %v545_v6, %v509_v22 }
 0x56c   :  { %514 = vst.msk [vmem:[%s1006_s11 + $0x8] sm:$0xff] %vm512_vm3, %v510_v23 }

</bundles_post_ra>
